<compile_context>
chip_gen: v6e
topology: v6e:2x2x1
jax: 0.10.0
libtpu: 0.0.40
codegen_flags: <defaults>
</compile_context>

<pallas_src>
import numpy as np
import jax
import jax.numpy as jnp
from jax.experimental import pallas as pl
from jax.experimental.pallas import tpu as pltpu


def _round_up(x, m):
    return ((x + m - 1) // m) * m


# ---------------------------------------------------------------------------
# Pallas kernel: full decoder forward on a padded batch tile.
#   y_ref       : (tb, NXP)      f32   full (padded) input tile
#   w1_ref      : (NXP, HP)      bf16  gather-folded first layer
#   w23_ref     : (2, HP, HP)    bf16  hidden layers 2 and 3
#   w4_ref      : (HP, NXP)      bf16  scatter-folded last layer
#   bm_ref      : (5, WMAX)      f32   rows: b1, b2, b3, b4_full, control mask
#   o_ref       : (tb, NXP)      f32
# ---------------------------------------------------------------------------
def _decoder_kernel(y_ref, w1_ref, w23_ref, w4_ref, bm_ref, o_ref):
    NXP, HP = w1_ref.shape
    wdt = w1_ref.dtype

    y = y_ref[...]                                   # f32, (tb, NXP)
    b1 = bm_ref[0:1, :HP]
    b2 = bm_ref[1:2, :HP]
    b3 = bm_ref[2:3, :HP]
    b4 = bm_ref[3:4, :NXP]
    ctrl = bm_ref[4:5, :NXP]                         # 1.0 at control columns

    h = jnp.dot(y.astype(wdt), w1_ref[...],
                preferred_element_type=jnp.float32) + b1
    h = jnp.maximum(h, 0.0)
    h = jnp.dot(h.astype(wdt), w23_ref[0],
                preferred_element_type=jnp.float32) + b2
    h = jnp.maximum(h, 0.0)
    h = jnp.dot(h.astype(wdt), w23_ref[1],
                preferred_element_type=jnp.float32) + b3
    h = jnp.maximum(h, 0.0)
    out = jnp.dot(h.astype(wdt), w4_ref[...],
                  preferred_element_type=jnp.float32) + b4

    # control pass-through (exact, f32), everything else from the MLP
    o_ref[...] = jnp.where(ctrl > 0.5, y, out).astype(o_ref.dtype)


# ---------------------------------------------------------------------------
# Decoder module (parameters + forward), mirroring the PyTorch semantics.
# ---------------------------------------------------------------------------
class Decoder:
    def __init__(self, nxny, M, hidden_dim, P, control_indices, key,
                 weight_dtype=jnp.bfloat16):
        assert len(control_indices) == M
        # the reference forward requires P == nxny (it gathers nxny - M cols
        # of y and feeds them to a Linear(P - M, ...))
        assert P == nxny, "Decoder.forward requires P == nxny"
        self.nxny = nxny
        self.M = M
        self.P = P
        self.hidden_dim = hidden_dim

        ctrl = np.asarray(control_indices, dtype=np.int64)
        mask = np.ones(nxny, dtype=bool)
        mask[ctrl] = False
        nci = np.nonzero(mask)[0]                    # sorted non-control idx
        self.control_indices = jnp.asarray(ctrl, dtype=jnp.int32)
        self.non_control_indices = jnp.asarray(nci, dtype=jnp.int32)

        # ----- raw f32 params (PyTorch-Linear-style uniform init) -----------
        dims = [(P - M, hidden_dim), (hidden_dim, hidden_dim),
                (hidden_dim, hidden_dim), (hidden_dim, nxny - M)]
        params = []
        keys = jax.random.split(key, 2 * len(dims))
        for i, (fan_in, fan_out) in enumerate(dims):
            bound = 1.0 / np.sqrt(fan_in)
            w = jax.random.uniform(keys[2 * i], (fan_in, fan_out),
                                   jnp.float32, -bound, bound)
            b = jax.random.uniform(keys[2 * i + 1], (1, fan_out),
                                   jnp.float32, -bound, bound)
            params += [w, b]
        self.params_f32 = tuple(params)              # kept for the reference

        # ----- padded / folded / packed kernel operands ---------------------
        NXP = _round_up(nxny, 128)
        HP = _round_up(hidden_dim, 128)
        WMAX = max(NXP, HP)
        self.nxny_pad, self.hidden_pad, self.wmax = NXP, HP, WMAX

        w1, b1, w2, b2, w3, b3, w4, b4 = [np.asarray(p) for p in params]

        w1_full = np.zeros((NXP, HP), np.float32)
        w1_full[nci, :hidden_dim] = w1               # fold non-control gather

        w23 = np.zeros((2, HP, HP), np.float32)
        w23[0, :hidden_dim, :hidden_dim] = w2
        w23[1, :hidden_dim, :hidden_dim] = w3

        w4_full = np.zeros((HP, NXP), np.float32)
        w4_full[:hidden_dim, nci] = w4               # fold output scatter

        biasmask = np.zeros((5, WMAX), np.float32)
        biasmask[0, :hidden_dim] = b1[0]
        biasmask[1, :hidden_dim] = b2[0]
        biasmask[2, :hidden_dim] = b3[0]
        biasmask[3, nci] = b4[0]
        biasmask[4, ctrl] = 1.0                      # control-column mask

        self.w1 = jnp.asarray(w1_full, dtype=weight_dtype)
        self.w23 = jnp.asarray(w23, dtype=weight_dtype)
        self.w4 = jnp.asarray(w4_full, dtype=weight_dtype)
        self.biasmask = jnp.asarray(biasmask, dtype=jnp.float32)

    def __call__(self, y):
        # y: (batch, nxny)
        B, Ny = y.shape
        assert Ny == self.nxny
        NXP, HP, WMAX = self.nxny_pad, self.hidden_pad, self.wmax

        tb = min(128, _round_up(B, 8))               # batch tile (sublane mult)
        B_pad = _round_up(B, tb)
        y_pad = jnp.pad(y.astype(jnp.float32),
                        ((0, B_pad - B), (0, NXP - Ny)))

        flops = 2 * B_pad * (NXP * HP + 2 * HP * HP + HP * NXP)
        bytes_accessed = (
            y_pad.size * 4
            + self.w1.size * self.w1.dtype.itemsize
            + self.w23.size * self.w23.dtype.itemsize
            + self.w4.size * self.w4.dtype.itemsize
            + self.biasmask.size * 4
            + B_pad * NXP * 4)

        out_pad = pl.pallas_call(
            _decoder_kernel,
            out_shape=jax.ShapeDtypeStruct((B_pad, NXP), jnp.float32),
            grid=(B_pad // tb,),
            in_specs=[
                pl.BlockSpec((tb, NXP), lambda b: (b, 0)),
                pl.BlockSpec((NXP, HP), lambda b: (0, 0)),     # grid-invariant
                pl.BlockSpec((2, HP, HP), lambda b: (0, 0, 0)),
                pl.BlockSpec((HP, NXP), lambda b: (0, 0)),
                pl.BlockSpec((5, WMAX), lambda b: (0, 0)),
            ],
            out_specs=pl.BlockSpec((tb, NXP), lambda b: (b, 0)),
            compiler_params=pltpu.CompilerParams(
                dimension_semantics=("parallel",)),
            cost_estimate=pl.CostEstimate(
                flops=flops, transcendentals=0,
                bytes_accessed=bytes_accessed),
        )(y_pad, self.w1, self.w23, self.w4, self.biasmask)

        return out_pad[:B, :self.nxny].astype(y.dtype)


# ---------------------------------------------------------------------------
# Pure-JAX f32 reference (mirrors the PyTorch module exactly)
# ---------------------------------------------------------------------------
def reference_forward(dec, y):
    w1, b1, w2, b2, w3, b3, w4, b4 = dec.params_f32
    y_nc = y[:, dec.non_control_indices]
    h = jnp.maximum(y_nc @ w1 + b1, 0.0)
    h = jnp.maximum(h @ w2 + b2, 0.0)
    h = jnp.maximum(h @ w3 + b3, 0.0)
    out_nc = h @ w4 + b4
    x = jnp.zeros((y.shape[0], dec.nxny), dtype=y.dtype)
    x = x.at[:, dec.control_indices].set(y[:, dec.control_indices])
    x = x.at[:, dec.non_control_indices].set(out_nc)
    return x


if __name__ == "__main__":
    # Small, deterministic configuration (P == nxny, as the forward requires).
    nxny = 32
    P = 32
    M = 4
    hidden_dim = 32
    batch = 4
    control_indices = [0, 5, 11, 17]

    key = jax.random.PRNGKey(0)
    pkey, ykey = jax.random.split(key)

    dec = Decoder(nxny, M, hidden_dim, P, control_indices, pkey)
    y = jax.random.normal(ykey, (batch, nxny), dtype=jnp.float32)

    out = dec(y)
    out = jax.block_until_ready(out)

    ref = reference_forward(dec, y)

    # control columns pass through in f32 inside the kernel -> (near-)exact
    np.testing.assert_allclose(
        np.asarray(out)[:, np.asarray(control_indices)],
        np.asarray(y)[:, np.asarray(control_indices)],
        rtol=0, atol=1e-7)
    # bf16 weights / bf16 matmul inputs vs f32 reference -> loose tolerance
    np.testing.assert_allclose(np.asarray(out), np.asarray(ref),
                               rtol=5e-2, atol=5e-2)
    print("KERNEL_OK")
</pallas_src>

<mosaic_0001>
module attributes {stable_mosaic.version = 11 : i64} {
  func.func @_decoder_kernel(%arg0: i32, %arg1: memref<8x128xf32, #tpu.memory_space<vmem>>, %arg2: memref<128x128xbf16, #tpu.memory_space<vmem>>, %arg3: memref<2x128x128xbf16, #tpu.memory_space<vmem>>, %arg4: memref<128x128xbf16, #tpu.memory_space<vmem>>, %arg5: memref<5x128xf32, #tpu.memory_space<vmem>>, %arg6: memref<8x128xf32, #tpu.memory_space<vmem>>) attributes {dimension_semantics = [#tpu.dimension_semantics<parallel>], iteration_bounds = array<i64: 1>, scalar_prefetch = 0 : i64, scratch_operands = 0 : i64, tpu.core_type = #tpu.core_type<tc>, window_params = [{transform_indices = @transform_0, window_bounds = array<i64: 8, 128>}, {pipeline_mode = #tpu.pipeline_mode<synchronous>, transform_indices = @transform_1, window_bounds = array<i64: 128, 128>}, {pipeline_mode = #tpu.pipeline_mode<synchronous>, transform_indices = @transform_2, window_bounds = array<i64: 2, 128, 128>}, {pipeline_mode = #tpu.pipeline_mode<synchronous>, transform_indices = @transform_3, window_bounds = array<i64: 128, 128>}, {pipeline_mode = #tpu.pipeline_mode<synchronous>, transform_indices = @transform_4, window_bounds = array<i64: 5, 128>}, {transform_indices = @transform_5, window_bounds = array<i64: 8, 128>}]} {
    %c0 = arith.constant 0 : index
    %c0_0 = arith.constant 0 : index
    %0 = vector.load %arg1[%c0, %c0_0] : memref<8x128xf32, #tpu.memory_space<vmem>>, vector<8x128xf32>
    %c0_1 = arith.constant 0 : index
    %c0_2 = arith.constant 0 : index
    %1 = vector.load %arg5[%c0_1, %c0_2] : memref<5x128xf32, #tpu.memory_space<vmem>>, vector<1x128xf32>
    %c1 = arith.constant 1 : index
    %c0_3 = arith.constant 0 : index
    %2 = vector.load %arg5[%c1, %c0_3] : memref<5x128xf32, #tpu.memory_space<vmem>>, vector<1x128xf32>
    %c2 = arith.constant 2 : index
    %c0_4 = arith.constant 0 : index
    %3 = vector.load %arg5[%c2, %c0_4] : memref<5x128xf32, #tpu.memory_space<vmem>>, vector<1x128xf32>
    %c3 = arith.constant 3 : index
    %c0_5 = arith.constant 0 : index
    %4 = vector.load %arg5[%c3, %c0_5] : memref<5x128xf32, #tpu.memory_space<vmem>>, vector<1x128xf32>
    %c4 = arith.constant 4 : index
    %c0_6 = arith.constant 0 : index
    %5 = vector.load %arg5[%c4, %c0_6] : memref<5x128xf32, #tpu.memory_space<vmem>>, vector<1x128xf32>
    %6 = arith.truncf %0 : vector<8x128xf32> to vector<8x128xbf16>
    %c0_7 = arith.constant 0 : index
    %c0_8 = arith.constant 0 : index
    %7 = vector.load %arg2[%c0_7, %c0_8] : memref<128x128xbf16, #tpu.memory_space<vmem>>, vector<128x128xbf16>
    %cst = arith.constant dense<0.000000e+00> : vector<8x128xf32>
    %8 = tpu.matmul %6, %7, %cst {dimension_numbers = #tpu.dot_dimension_numbers<[1], [0], [0], [1], [0, 0, 1, 1], [], []>} : vector<8x128xbf16>, vector<128x128xbf16>, vector<8x128xf32> -> vector<8x128xf32>
    %9 = vector.broadcast %1 : vector<1x128xf32> to vector<8x128xf32>
    %10 = arith.addf %8, %9 : vector<8x128xf32>
    %cst_9 = arith.constant 0.000000e+00 : f32
    %11 = vector.broadcast %cst_9 : f32 to vector<8x128xf32>
    %12 = arith.maximumf %10, %11 : vector<8x128xf32>
    %13 = arith.truncf %12 : vector<8x128xf32> to vector<8x128xbf16>
    %c0_10 = arith.constant 0 : index
    %c0_11 = arith.constant 0 : index
    %c0_12 = arith.constant 0 : index
    %14 = vector.load %arg3[%c0_10, %c0_11, %c0_12] : memref<2x128x128xbf16, #tpu.memory_space<vmem>>, vector<1x128x128xbf16>
    %15 = vector.shape_cast %14 : vector<1x128x128xbf16> to vector<128x128xbf16>
    %cst_13 = arith.constant dense<0.000000e+00> : vector<8x128xf32>
    %16 = tpu.matmul %13, %15, %cst_13 {dimension_numbers = #tpu.dot_dimension_numbers<[1], [0], [0], [1], [0, 0, 1, 1], [], []>} : vector<8x128xbf16>, vector<128x128xbf16>, vector<8x128xf32> -> vector<8x128xf32>
    %17 = vector.broadcast %2 : vector<1x128xf32> to vector<8x128xf32>
    %18 = arith.addf %16, %17 : vector<8x128xf32>
    %cst_14 = arith.constant 0.000000e+00 : f32
    %19 = vector.broadcast %cst_14 : f32 to vector<8x128xf32>
    %20 = arith.maximumf %18, %19 : vector<8x128xf32>
    %21 = arith.truncf %20 : vector<8x128xf32> to vector<8x128xbf16>
    %c1_15 = arith.constant 1 : index
    %c0_16 = arith.constant 0 : index
    %c0_17 = arith.constant 0 : index
    %22 = vector.load %arg3[%c1_15, %c0_16, %c0_17] : memref<2x128x128xbf16, #tpu.memory_space<vmem>>, vector<1x128x128xbf16>
    %23 = vector.shape_cast %22 : vector<1x128x128xbf16> to vector<128x128xbf16>
    %cst_18 = arith.constant dense<0.000000e+00> : vector<8x128xf32>
    %24 = tpu.matmul %21, %23, %cst_18 {dimension_numbers = #tpu.dot_dimension_numbers<[1], [0], [0], [1], [0, 0, 1, 1], [], []>} : vector<8x128xbf16>, vector<128x128xbf16>, vector<8x128xf32> -> vector<8x128xf32>
    %25 = vector.broadcast %3 : vector<1x128xf32> to vector<8x128xf32>
    %26 = arith.addf %24, %25 : vector<8x128xf32>
    %cst_19 = arith.constant 0.000000e+00 : f32
    %27 = vector.broadcast %cst_19 : f32 to vector<8x128xf32>
    %28 = arith.maximumf %26, %27 : vector<8x128xf32>
    %29 = arith.truncf %28 : vector<8x128xf32> to vector<8x128xbf16>
    %c0_20 = arith.constant 0 : index
    %c0_21 = arith.constant 0 : index
    %30 = vector.load %arg4[%c0_20, %c0_21] : memref<128x128xbf16, #tpu.memory_space<vmem>>, vector<128x128xbf16>
    %cst_22 = arith.constant dense<0.000000e+00> : vector<8x128xf32>
    %31 = tpu.matmul %29, %30, %cst_22 {dimension_numbers = #tpu.dot_dimension_numbers<[1], [0], [0], [1], [0, 0, 1, 1], [], []>} : vector<8x128xbf16>, vector<128x128xbf16>, vector<8x128xf32> -> vector<8x128xf32>
    %32 = vector.broadcast %4 : vector<1x128xf32> to vector<8x128xf32>
    %33 = arith.addf %31, %32 : vector<8x128xf32>
    %cst_23 = arith.constant 5.000000e-01 : f32
    %34 = vector.broadcast %cst_23 : f32 to vector<1x128xf32>
    %35 = arith.cmpf ogt, %5, %34 : vector<1x128xf32>
    %36 = vector.shape_cast %35 : vector<1x128xi1> to vector<1x128xi1>
    %37 = vector.broadcast %36 : vector<1x128xi1> to vector<8x128xi1>
    %38 = arith.select %37, %0, %33 : vector<8x128xi1>, vector<8x128xf32>
    %c0_24 = arith.constant 0 : index
    %c0_25 = arith.constant 0 : index
    %39 = vector.load %arg6[%c0_24, %c0_25] : memref<8x128xf32, #tpu.memory_space<vmem>>, vector<8x128xf32>
    tpu.vector_store %arg6[%c0_24, %c0_25], %38 {strides = array<i32>} : memref<8x128xf32, #tpu.memory_space<vmem>>, vector<8x128xf32>,
    return
  }
  func.func @transform_0(%arg0: i32) -> (i32, i32) {
    %c0_i32 = arith.constant 0 : i32
    %c0_i32_0 = arith.constant 0 : i32
    return %arg0, %c0_i32 : i32, i32
  }
  func.func @transform_1(%arg0: i32) -> (i32, i32) {
    %c0_i32 = arith.constant 0 : i32
    %c0_i32_0 = arith.constant 0 : i32
    %c0_i32_1 = arith.constant 0 : i32
    return %c0_i32, %c0_i32_0 : i32, i32
  }
  func.func @transform_2(%arg0: i32) -> (i32, i32, i32) {
    %c0_i32 = arith.constant 0 : i32
    %c0_i32_0 = arith.constant 0 : i32
    %c0_i32_1 = arith.constant 0 : i32
    %c0_i32_2 = arith.constant 0 : i32
    return %c0_i32, %c0_i32_0, %c0_i32_1 : i32, i32, i32
  }
  func.func @transform_3(%arg0: i32) -> (i32, i32) {
    %c0_i32 = arith.constant 0 : i32
    %c0_i32_0 = arith.constant 0 : i32
    %c0_i32_1 = arith.constant 0 : i32
    return %c0_i32, %c0_i32_0 : i32, i32
  }
  func.func @transform_4(%arg0: i32) -> (i32, i32) {
    %c0_i32 = arith.constant 0 : i32
    %c0_i32_0 = arith.constant 0 : i32
    %c0_i32_1 = arith.constant 0 : i32
    return %c0_i32, %c0_i32_0 : i32, i32
  }
  func.func @transform_5(%arg0: i32) -> (i32, i32) {
    %c0_i32 = arith.constant 0 : i32
    %c0_i32_0 = arith.constant 0 : i32
    return %arg0, %c0_i32 : i32, i32
  }
}

</mosaic_0001>

<bundles_post_ra>
// kernel: tpu_custom_call.1
= control target key start
LH: loop header
LB: loop body
LE: loop exit
PB: predicated region body
PF: predicated region fallthrough
CT: control target
= control target key end

     0   :  { %10 = vsyncpa [#allocation3], 0  ;;  %s994_s0 = inlined_call_operand.hbm [shape: f32[8,128], index: 0, kind: input, shape index: {}]   ;;  %s995_s1 = inlined_call_operand.hbm [shape: bf16[128,128], index: 1, kind: input, shape index: {}]   ;;  %s996_s2 = inlined_call_operand.hbm [shape: bf16[2,128,128], index: 2, kind: input, shape index: {}]   ;;  %s997_s3 = inlined_call_operand.hbm [shape: bf16[128,128], index: 3, kind: input, shape index: {}]   ;;  %s998_s4 = inlined_call_operand.hbm [shape: f32[5,128], index: 4, kind: input, shape index: {}]   ;;  %s999_s5 = inlined_call_operand.hbm [shape: f32[8,128], index: 5, kind: output, shape index: {}]  }
   0x1   :  { %11 = vsyncpa [#allocation6], 0 }
   0x2   :  { %12 = vsyncpa [#allocation9], 0 }
   0x3   :  { %13 = vsyncpa [#allocation4], 0  ;;  %s881_s18 = smov [#allocation5]  }
   0x4   :  { %s29_s19 = sshll.u32 %s881_s18, 4  ;;  %s30_s19 = int_to_ptr.vmem [resolvable:$true] %s29_s19 }
   0x5   :  { %s761_s20 = scalar_lea.vmem %s30_s19, 1024  ;;  %p766_p1 = scmp.lt.s32.totalorder %s30_s19, %s30_s19 }
   0x6   :  { %p762_p0 = scmp.ne.s32.totalorder %s30_s19, %s761_s20  ;;  %p767_p2 = scmp.lt.s32.totalorder %s761_s20, %s761_s20 }
   0x8   :  { %p768_p3 = por %p767_p2, %p766_p1 }
   0xa   :  { %p769_p4 = pnand %p768_p3, %p762_p0 }
   0xc   :  { %772 = shalt.err (!%p769_p4)
}
   0xd   :  { %s882_s21 = smov 64   ;;  %s883_s22 = smov 4  }
   0xe   :  { %35 = dma.hbm_to_vmem [thread:$0]  %s995_s1, 1024, %s30_s19, [#allocation6], %s882_s21, %s882_s21, %s883_s22  }
   0xf   :  { %s884_s25 = smov [#allocation8]   ;;  %s885_s27 = smov [#allocation2]  }
  0x10   :  { %s53_s26 = sshll.u32 %s884_s25, 4  ;;  %s20_s28 = sshll.u32 %s885_s27, 4  ;;  %s54_s26 = int_to_ptr.vmem [resolvable:$true] %s53_s26  ;;  %s21_s28 = int_to_ptr.vmem [resolvable:$true] %s20_s28 }
  0x11   :  { %s781_s29 = scalar_lea.vmem %s54_s26, 1024  ;;  %p786_p6 = scmp.lt.s32.totalorder %s54_s26, %s54_s26 }
  0x12   :  { %p782_p5 = scmp.ne.s32.totalorder %s54_s26, %s781_s29  ;;  %p787_p7 = scmp.lt.s32.totalorder %s781_s29, %s781_s29 }
  0x14   :  { %p788_p8 = por %p787_p7, %p786_p6 }
  0x16   :  { %p789_p9 = pnand %p788_p8, %p782_p5 }
  0x18   :  { %792 = shalt.err (!%p789_p9)
}
  0x19   :  { %59 = dma.hbm_to_vmem [thread:$0]  %s997_s3, 1024, %s54_s26, [#allocation9], %s882_s21, %s882_s21, %s883_s22  }
  0x1a   :  { %s801_s1 = scalar_lea.vmem %s21_s28, 128  ;;  %p806_p11 = scmp.lt.s32.totalorder %s21_s28, %s21_s28 }
  0x1b   :  { %p802_p10 = scmp.ne.s32.totalorder %s21_s28, %s801_s1  ;;  %p807_p12 = scmp.lt.s32.totalorder %s801_s1, %s801_s1 }
  0x1d   :  { %p808_p13 = por %p807_p12, %p806_p11 }
  0x1f   :  { %p809_p0 = pnand %p808_p13, %p802_p10 }
  0x21   :  { %812 = shalt.err (!%p809_p0)
}
  0x22   :  { %23 = dma.hbm_to_vmem [thread:$0]  %s994_s0, 128, %s21_s28, [#allocation3]  }
  0x23   :  { %s886_s9 = smov [#allocation7]   ;;  %s887_s11 = smov [#allocation10]  }
  0x24   :  { %s41_s10 = sshll.u32 %s886_s9, 4  ;;  %s66_s12 = sshll.u32 %s887_s11, 4  ;;  %s42_s10 = int_to_ptr.vmem [resolvable:$true] %s41_s10  ;;  %s67_s12 = int_to_ptr.vmem [resolvable:$true] %s66_s12 }
  0x25   :  { %s821_s13 = scalar_lea.vmem %s42_s10, 2048  ;;  %p826_p2 = scmp.lt.s32.totalorder %s42_s10, %s42_s10 }
  0x26   :  { %p822_p1 = scmp.ne.s32.totalorder %s42_s10, %s821_s13  ;;  %p827_p3 = scmp.lt.s32.totalorder %s821_s13, %s821_s13 }
  0x28   :  { %p828_p4 = por %p827_p3, %p826_p2 }
  0x2a   :  { %p829_p5 = pnand %p828_p4, %p822_p1 }
  0x2c   :  { %832 = shalt.err (!%p829_p5)
}
  0x2d   :  { %47 = dma.hbm_to_vmem [thread:$0]  %s996_s2, 2048, %s42_s10, [#allocation6], %s882_s21, %s882_s21, %s883_s22  }
  0x2e   :  { %s841_s0 = scalar_lea.vmem %s67_s12, 128  ;;  %p846_p7 = scmp.lt.s32.totalorder %s67_s12, %s67_s12 }
  0x2f   :  { %p842_p6 = scmp.ne.s32.totalorder %s67_s12, %s841_s0  ;;  %p847_p8 = scmp.lt.s32.totalorder %s841_s0, %s841_s0 }
  0x31   :  { %p848_p9 = por %p847_p8, %p846_p7 }
  0x33   :  { %p849_p10 = pnand %p848_p9, %p842_p6 }
  0x35   :  { %852 = shalt.err (!%p849_p10)
}
  0x36   :  { %69 = dma.hbm_to_vmem [thread:$0]  %s998_s4, 128, %s67_s12, [#allocation9]  }
  0x37   :  { %873 = dma.done.wait [#allocation3], 128  }
  0x38   :  { %874 = vsyncadd [#allocation3], 4294967168 }
  0x39   :  { %875 = dma.done.wait [#allocation6], 3072  }
  0x3a   :  { %876 = vsyncadd [#allocation6], 4294964224 }
  0x3b   :  { %877 = dma.done.wait [#allocation9], 1152  }
  0x3c   :  { %878 = vsyncadd [#allocation9], 4294966144  ;;  %v888_v0 = vmov 0.0   ;;  %vm889_vm0 = vmmov 0   ;;  %v721_v1 = vld [vmem:[#allocation5 + $0x38] sm:$0xff]   ;;  %v722_v2 = vld [vmem:[#allocation5 + $0x30] sm:$0xff]   ;;  %v534_v59 = vlaneseq }
  0x3d   :  { %630 = vmatprep.subr.bf16.mxu0 %v888_v0  ;;  %646 = vmatprep.mubr.msk.bf16.mxu0 %vm889_vm0, %v888_v0  ;;  %v723_v3 = vld [vmem:[#allocation5 + $0x28] sm:$0xff]   ;;  %v729_v4 = vld [vmem:[#allocation7 + $0x38] sm:$0xff]   ;;  %v724_v5 = vld [vmem:[#allocation5 + $0x20] sm:$0xff]   ;;  %v890_v63 = vmov 0   ;;  %s891_s2 = smov [#allocation11]  }
  0x3e   :  { %650 = vmatprep.subr.bf16.mxu1 %v888_v0  ;;  %666 = vmatprep.mubr.msk.bf16.mxu1 %vm889_vm0, %v888_v0  ;;  %v730_v6 = vld [vmem:[#allocation7 + $0x30] sm:$0xff]   ;;  %v725_v7 = vld [vmem:[#allocation5 + $0x18] sm:$0xff]   ;;  %v731_v8 = vld [vmem:[#allocation7 + $0x28] sm:$0xff]   ;;  %v535_v61 = vshrl.u32 %v534_v59, 7  ;;  %s547_s4 = sshll.u32 %s891_s2, 4  ;;  %s548_s4 = int_to_ptr.vmem [resolvable:$true] %s547_s4 }
  0x3f   :  { %631 = vmatpush3.bf16.msra.mxu0 %v721_v1  ;;  %651 = vmatpush3.bf16.msra.mxu1 %v729_v4  ;;  %v726_v9 = vld [vmem:[#allocation5 + $0x10] sm:$0xff]   ;;  %v732_v10 = vld [vmem:[#allocation7 + $0x20] sm:$0xff]   ;;  %v727_v11 = vld [vmem:[#allocation5 + $0x8] sm:$0xff]   ;;  %s853_s17 = scalar_lea.vmem %s548_s4, 128  ;;  %p858_p12 = scmp.lt.s32.totalorder %s548_s4, %s548_s4 }
  0x40   :  { %632 = vmatprep.subr.bf16.mxu0 %v888_v0  ;;  %652 = vmatprep.subr.bf16.mxu1 %v888_v0  ;;  %v733_v12 = vld [vmem:[#allocation7 + $0x18] sm:$0xff]   ;;  %v728_v13 = vld [vmem:[#allocation5] sm:$0xff]   ;;  %v734_v15 = vld [vmem:[#allocation7 + $0x10] sm:$0xff]   ;;  %v536_v62 = vsub.s32 0, %v535_v61  ;;  %p854_p11 = scmp.ne.s32.totalorder %s548_s4, %s853_s17  ;;  %p859_p13 = scmp.lt.s32.totalorder %s853_s17, %s853_s17 }
  0x41   :  { %v962_v14 = vld [vmem:[#allocation2] sm:$0xff]  ;;  %v735_v17 = vld [vmem:[#allocation7 + $0x8] sm:$0xff]   ;;  %v736_v18 = vld [vmem:[#allocation7] sm:$0xff]  }
  0x42   :  { %v92_v16 = vpack.c.bf16 %v962_v14, %v962_v14  ;;  %v737_v19 = vld [vmem:[#allocation7 + $0x78] sm:$0xff]   ;;  %v738_v20 = vld [vmem:[#allocation7 + $0x70] sm:$0xff]   ;;  %v739_v21 = vld [vmem:[#allocation7 + $0x68] sm:$0xff]   ;;  %p860_p0 = por %p859_p13, %p858_p12 }
  0x43   :  { %633 = vmatpush3.bf16.msra.mxu0 %v722_v2  ;;  %653 = vmatpush3.bf16.msra.mxu1 %v730_v6  ;;  %v740_v22 = vld [vmem:[#allocation7 + $0x60] sm:$0xff]   ;;  %v741_v23 = vld [vmem:[#allocation7 + $0x58] sm:$0xff]   ;;  %v742_v24 = vld [vmem:[#allocation7 + $0x50] sm:$0xff]  }
  0x44   :  { %634 = vmatprep.subr.bf16.mxu0 %v888_v0  ;;  %654 = vmatprep.subr.bf16.mxu1 %v888_v0  ;;  %v558_v25 = vld [vmem:[#allocation10] ss:$0 sm:$0xff]  ;;  %v743_v33 = vld [vmem:[#allocation7 + $0x48] sm:$0xff]   ;;  %v745_v35 = vld [vmem:[#allocation8 + $0x38] sm:$0xff]   ;;  %p861_p1 = pnand %p860_p0, %p854_p11 }
  0x45   :  { %v744_v34 = vld [vmem:[#allocation7 + $0x40] sm:$0xff]   ;;  %v746_v36 = vld [vmem:[#allocation8 + $0x30] sm:$0xff]   ;;  %v747_v37 = vld [vmem:[#allocation8 + $0x28] sm:$0xff]  }
  0x46   :  { %v748_v38 = vld [vmem:[#allocation8 + $0x20] sm:$0xff]   ;;  %v749_v39 = vld [vmem:[#allocation8 + $0x18] sm:$0xff]   ;;  %v750_v40 = vld [vmem:[#allocation8 + $0x10] sm:$0xff]  }
  0x47   :  { %635 = vmatpush3.bf16.msra.mxu0 %v723_v3  ;;  %655 = vmatpush3.bf16.msra.mxu1 %v731_v8  ;;  %v567_v41 = vld [vmem:[#allocation10 + $0x1] ss:$0 sm:$0xff]  ;;  %v751_v49 = vld [vmem:[#allocation8 + $0x8] sm:$0xff]   ;;  %v576_v51 = vld [vmem:[#allocation10 + $0x2] ss:$0 sm:$0xff] }
  0x48   :  { %636 = vmatprep.subr.bf16.mxu0 %v888_v0  ;;  %656 = vmatprep.subr.bf16.mxu1 %v888_v0  ;;  %v752_v50 = vld [vmem:[#allocation8] sm:$0xff]  }
  0x49   :  { %v91_v60 = vld [vmem:[#allocation10 + $0x4] sm:$0x1] }
  0x4a   :  { %vm532_vm1 = vcmp.gt.f32.partialorder %v91_v60, 0.5 }
  0x4b   :  { %637 = vmatpush3.bf16.msra.mxu0 %v724_v5  ;;  %657 = vmatpush3.bf16.msra.mxu1 %v732_v10  ;;  %v533_v1 = vsel %vm532_vm1, 1, %v890_v63 }
  0x4c   :  { %638 = vmatprep.subr.bf16.mxu0 %v888_v0  ;;  %658 = vmatprep.subr.bf16.mxu1 %v888_v0  ;;  %v537_v2 = vrot.slane %v533_v1, %v536_v62 }
  0x4e   :  { %vm538_vm2 = vcmp.eq.s32.totalorder %v537_v2, 1 }
  0x4f   :  { %639 = vmatpush3.bf16.msra.mxu0 %v725_v7  ;;  %659 = vmatpush3.bf16.msra.mxu1 %v733_v12 }
  0x50   :  { %640 = vmatprep.subr.bf16.mxu0 %v888_v0  ;;  %660 = vmatprep.subr.bf16.mxu1 %v888_v0 }
  0x53   :  { %641 = vmatpush3.bf16.msra.mxu0 %v726_v9  ;;  %661 = vmatpush3.bf16.msra.mxu1 %v734_v15 }
  0x54   :  { %642 = vmatprep.subr.bf16.mxu0 %v888_v0  ;;  %662 = vmatprep.subr.bf16.mxu1 %v888_v0 }
  0x57   :  { %643 = vmatpush3.bf16.msra.mxu0 %v727_v11  ;;  %663 = vmatpush3.bf16.msra.mxu1 %v735_v17 }
  0x58   :  { %644 = vmatprep.subr.bf16.mxu0 %v888_v0  ;;  %664 = vmatprep.subr.bf16.mxu1 %v888_v0 }
  0x5b   :  { %645 = vmatpush3.bf16.msra.mxu0 %v728_v13  ;;  %665 = vmatpush3.bf16.msra.mxu1 %v736_v18 }
  0x5c   :  { %670 = vmatprep.subr.bf16.mxu0 %v888_v0  ;;  %690 = vmatprep.subr.bf16.mxu1 %v888_v0 }
  0x5e   :  { %647 = vmatmul.mubr.bf16.vlgmr.msra.gmra.mxu0 %v92_v16 }
  0x5f   :  { %686 = vmatprep.mubr.msk.bf16.mxu0 %vm889_vm0, %v888_v0  ;;  %671 = vmatpush3.bf16.msra.mxu0 %v737_v19 }
  0x60   :  { %672 = vmatprep.subr.bf16.mxu0 %v888_v0 }
  0x63   :  { %673 = vmatpush3.bf16.msra.mxu0 %v738_v20 }
  0x64   :  { %674 = vmatprep.subr.bf16.mxu0 %v888_v0 }
  0x67   :  { %675 = vmatpush3.bf16.msra.mxu0 %v739_v21 }
  0x68   :  { %676 = vmatprep.subr.bf16.mxu0 %v888_v0 }
  0x6b   :  { %677 = vmatpush3.bf16.msra.mxu0 %v740_v22 }
  0x6c   :  { %678 = vmatprep.subr.bf16.mxu0 %v888_v0 }
  0x6f   :  { %679 = vmatpush3.bf16.msra.mxu0 %v741_v23 }
  0x70   :  { %680 = vmatprep.subr.bf16.mxu0 %v888_v0 }
  0x73   :  { %681 = vmatpush3.bf16.msra.mxu0 %v742_v24 }
  0x74   :  { %682 = vmatprep.subr.bf16.mxu0 %v888_v0 }
  0x77   :  { %683 = vmatpush3.bf16.msra.mxu0 %v743_v33 }
  0x78   :  { %684 = vmatprep.subr.bf16.mxu0 %v888_v0 }
  0x7b   :  { %685 = vmatpush3.bf16.msra.mxu0 %v744_v34 }
 0x11e   :  { %v195_v26 = vpop.f32.mrf.mxu0 }
 0x11f   :  { %v196_v27 = vadd.f32 %v558_v25, %v195_v26 }
 0x120   :  { %v648_v28 = vpop.f32.mrf.mxu0 }
 0x121   :  { %v201_v29 = vmax.f32 %v196_v27, 0.0 }
 0x122   :  { %v198_v30 = vpop.f32.mrf.mxu0 }
 0x123   :  { %v202_v31 = vpack.c.bf16 %v201_v29, %v201_v29 }
 0x124   :  { %v649_v32 = vpop.f32.mrf.mxu0 }
 0x125   :  { %667 = vmatmul.mubr.bf16.vlgmr.msra.gmra.mxu1 %v202_v31 }
 0x126   :  { %706 = vmatprep.mubr.msk.bf16.mxu1 %vm889_vm0, %v888_v0  ;;  %691 = vmatpush3.bf16.msra.mxu1 %v745_v35 }
 0x127   :  { %692 = vmatprep.subr.bf16.mxu1 %v888_v0 }
 0x12a   :  { %693 = vmatpush3.bf16.msra.mxu1 %v746_v36 }
 0x12b   :  { %694 = vmatprep.subr.bf16.mxu1 %v888_v0 }
 0x12e   :  { %695 = vmatpush3.bf16.msra.mxu1 %v747_v37 }
 0x12f   :  { %696 = vmatprep.subr.bf16.mxu1 %v888_v0 }
 0x132   :  { %697 = vmatpush3.bf16.msra.mxu1 %v748_v38 }
 0x133   :  { %698 = vmatprep.subr.bf16.mxu1 %v888_v0 }
 0x136   :  { %699 = vmatpush3.bf16.msra.mxu1 %v749_v39 }
 0x137   :  { %700 = vmatprep.subr.bf16.mxu1 %v888_v0 }
 0x13a   :  { %701 = vmatpush3.bf16.msra.mxu1 %v750_v40 }
 0x13b   :  { %702 = vmatprep.subr.bf16.mxu1 %v888_v0 }
 0x13e   :  { %703 = vmatpush3.bf16.msra.mxu1 %v751_v49 }
 0x13f   :  { %704 = vmatprep.subr.bf16.mxu1 %v888_v0  ;;  %v585_v0 = vld [vmem:[#allocation10 + $0x3] ss:$0 sm:$0xff] }
 0x142   :  { %705 = vmatpush3.bf16.msra.mxu1 %v752_v50 }
 0x1e5   :  { %v305_v42 = vpop.f32.mrf.mxu1 }
 0x1e6   :  { %v306_v43 = vadd.f32 %v567_v41, %v305_v42 }
 0x1e7   :  { %v668_v44 = vpop.f32.mrf.mxu1 }
 0x1e8   :  { %v311_v45 = vmax.f32 %v306_v43, 0.0 }
 0x1e9   :  { %v308_v46 = vpop.f32.mrf.mxu1 }
 0x1ea   :  { %v312_v47 = vpack.c.bf16 %v311_v45, %v311_v45 }
 0x1eb   :  { %v669_v48 = vpop.f32.mrf.mxu1 }
 0x1ec   :  { %687 = vmatmul.mubr.bf16.vlgmr.msra.gmra.mxu0 %v312_v47 }
 0x2ac   :  { %v416_v52 = vpop.f32.mrf.mxu0 }
 0x2ad   :  { %v417_v53 = vadd.f32 %v576_v51, %v416_v52 }
 0x2ae   :  { %v688_v54 = vpop.f32.mrf.mxu0 }
 0x2af   :  { %v422_v55 = vmax.f32 %v417_v53, 0.0 }
 0x2b0   :  { %v419_v56 = vpop.f32.mrf.mxu0 }
 0x2b1   :  { %v423_v57 = vpack.c.bf16 %v422_v55, %v422_v55 }
 0x2b2   :  { %v689_v58 = vpop.f32.mrf.mxu0 }
 0x2b3   :  { %707 = vmatmul.mubr.bf16.vlgmr.msra.gmra.mxu1 %v423_v57 }
 0x373   :  { %v526_v3 = vpop.f32.mrf.mxu1 }
 0x374   :  { %v527_v4 = vadd.f32 %v585_v0, %v526_v3 }
 0x375   :  { %v708_v5 = vpop.f32.mrf.mxu1 }
 0x376   :  { %v539_v6 = vsel %vm538_vm2, %v962_v14, %v527_v4 }
 0x377   :  { %v529_v7 = vpop.f32.mrf.mxu1  ;;  %540 = vst [vmem:[#allocation11] sm:$0xff] %v539_v6 }
 0x378   :  { %864 = shalt.err (!%p861_p1)
}
 0x379   :  { %550 = dma.vmem_to_hbm [thread:$0]  %s548_s4, 128, %s999_s5, [#allocation4]   ;;  %v709_v8 = vpop.f32.mrf.mxu1 }
 0x37a   :  { %879 = dma.done.wait [#allocation4], 128  }
 0x37b   :  { %880 = vsyncadd [#allocation4], 4294967168 }
 0x37c   :  { %554 = vsyncpa [#allocation3], 1 }
 0x37d   :  { %555 = vsyncpa [#allocation6], 1 }
 0x37e   :  { %556 = vsyncpa [#allocation9], 1 }
 0x37f   :  { %557 = vsyncpa [#allocation4], 1 }

</bundles_post_ra>
